<compile_context>
chip_gen: v6e
topology: v6e:2x2x1
jax: 0.10.0
libtpu: 0.0.40
codegen_flags: <defaults>
</compile_context>

<pallas_src>
import functools

import jax
import jax.numpy as jnp
from jax.experimental import pallas as pl
from jax.experimental.pallas import tpu as pltpu


# -----------------------------------------------------------------------------
# Fused Sobel-XY kernel: one grid step = `rows` independent (image, channel)
# planes, each flattened to a lane-dense H*W row.
# -----------------------------------------------------------------------------
def _sobelxy_kernel(m_ref, x_ref, o_ref, *, H, W):
    HW = H * W
    x = x_ref[...].astype(jnp.float32)          # (rows, H*W), f32 in-register

    # 0/1 edge-validity masks (precomputed in the wrapper, one lane row each).
    m_up = m_ref[0:1, :]      # a row above exists   (row >= 1)
    m_dn = m_ref[1:2, :]      # a row below exists   (row <= H-2)
    m_lf = m_ref[2:3, :]      # a left col exists    (col >= 1)
    m_rt = m_ref[3:4, :]      # a right col exists   (col <= W-2)

    # Neighbour taps = lane rolls on the flattened row-major pixel axis,
    # zeroed where the 3x3 window runs off the image (pad=1 semantics).
    # pltpu.roll matches jnp.roll: out[p] = in[p - shift]; positive shifts only.
    xu = pltpu.roll(x, W, 1) * m_up             # x[i-1, j]
    xd = pltpu.roll(x, HW - W, 1) * m_dn        # x[i+1, j]

    # Separable Sobel:
    #   Sobel-X = [1,2,1]^T (vertical smooth) (x) [1,0,-1] (horizontal diff)
    #   Sobel-Y = [1,0,-1]^T (vertical diff)  (x) [1,2,1]  (horizontal smooth)
    v = xu + 2.0 * x + xd                       # vertical smooth
    h = xu - xd                                 # vertical diff

    gx = pltpu.roll(v, 1, 1) * m_lf - pltpu.roll(v, HW - 1, 1) * m_rt
    gy = pltpu.roll(h, 1, 1) * m_lf + 2.0 * h + pltpu.roll(h, HW - 1, 1) * m_rt

    o_ref[...] = (jnp.abs(gx) + jnp.abs(gy)).astype(o_ref.dtype)


def juanji_sobelxy_forward(x, *, target_block_bytes=1 << 20):
    """x: (N, C, H, W) -> |sobelx(x)| + |sobely(x)|, same shape and dtype."""
    N, C, H, W = x.shape
    NC, HW = N * C, H * W

    # Free, contiguous reshape: (N, C, H, W) -> (N*C, H*W). Lane axis = H*W.
    x2 = x.reshape(NC, HW)

    # 0/1 edge masks, one lane-row per direction: [up, down, left, right].
    p = jnp.arange(HW, dtype=jnp.int32)
    row, col = p // W, p % W
    masks = jnp.stack(
        [row >= 1, row <= H - 2, col >= 1, col <= W - 2]
    ).astype(jnp.float32)                                     # (4, H*W)

    # Rows (independent channel-planes) per grid step: big enough to amortize
    # per-step pipeline overhead, a multiple of 8 sublanes, and small enough
    # that double-buffered in+out blocks stay well inside v7x's scoped VMEM.
    itemsize = jnp.dtype(x.dtype).itemsize
    rows = max(8, (target_block_bytes // max(1, HW * itemsize)) // 8 * 8)
    if rows >= NC:
        rows = NC          # tiny inputs: single block, no grid overhead
    grid = (pl.cdiv(NC, rows),)

    kernel = functools.partial(_sobelxy_kernel, H=H, W=W)
    out = pl.pallas_call(
        kernel,
        out_shape=jax.ShapeDtypeStruct((NC, HW), x.dtype),
        grid=grid,
        in_specs=[
            pl.BlockSpec((4, HW), lambda i: (0, 0)),     # masks (fetched once)
            pl.BlockSpec((rows, HW), lambda i: (i, 0)),
        ],
        out_specs=pl.BlockSpec((rows, HW), lambda i: (i, 0)),
        compiler_params=pltpu.CompilerParams(
            dimension_semantics=("parallel",),
            vmem_limit_bytes=32 * 1024 * 1024,
        ),
    )(masks, x2)
    return out.reshape(N, C, H, W)


# -----------------------------------------------------------------------------
# Pure-JAX reference (depthwise conv via feature_group_count) for sanity check.
# -----------------------------------------------------------------------------
def _ref_sobelxy(x):
    xf = x.astype(jnp.float32)
    C = x.shape[1]
    kx = jnp.array([[1.0, 0.0, -1.0],
                    [2.0, 0.0, -2.0],
                    [1.0, 0.0, -1.0]], jnp.float32)
    wx = jnp.tile(kx[None, None], (C, 1, 1, 1))      # (C, 1, 3, 3), OIHW
    wy = jnp.tile(kx.T[None, None], (C, 1, 1, 1))

    def dwconv(w):
        return jax.lax.conv_general_dilated(
            xf, w, window_strides=(1, 1), padding=[(1, 1), (1, 1)],
            dimension_numbers=("NCHW", "OIHW", "NCHW"),
            feature_group_count=C,
            precision=jax.lax.Precision.HIGHEST)

    return (jnp.abs(dwconv(wx)) + jnp.abs(dwconv(wy))).astype(x.dtype)


if __name__ == "__main__":
    key = jax.random.PRNGKey(0)
    # Small input consistent with the module: batch=2, channels=4, 16x16 image.
    x = jax.random.uniform(key, (2, 4, 16, 16), jnp.float32)

    out = juanji_sobelxy_forward(x)
    jax.block_until_ready(out)

    assert out.shape == x.shape
    assert out.dtype == x.dtype

    ref = _ref_sobelxy(x)
    assert jnp.allclose(out, ref, atol=1e-4, rtol=1e-4), \
        float(jnp.max(jnp.abs(out - ref)))

    print("KERNEL_OK")
</pallas_src>

<mosaic_0001>
module attributes {stable_mosaic.version = 11 : i64} {
  func.func @_sobelxy_kernel(%arg0: i32, %arg1: memref<4x256xf32, #tpu.memory_space<vmem>>, %arg2: memref<8x256xf32, #tpu.memory_space<vmem>>, %arg3: memref<8x256xf32, #tpu.memory_space<vmem>>) attributes {dimension_semantics = [#tpu.dimension_semantics<parallel>], iteration_bounds = array<i64: 1>, scalar_prefetch = 0 : i64, scratch_operands = 0 : i64, tpu.core_type = #tpu.core_type<tc>, window_params = [{pipeline_mode = #tpu.pipeline_mode<synchronous>, transform_indices = @transform_0, window_bounds = array<i64: 4, 256>}, {transform_indices = @transform_1, window_bounds = array<i64: 8, 256>}, {transform_indices = @transform_2, window_bounds = array<i64: 8, 256>}]} {
    %c0 = arith.constant 0 : index
    %c0_0 = arith.constant 0 : index
    %0 = vector.load %arg2[%c0, %c0_0] : memref<8x256xf32, #tpu.memory_space<vmem>>, vector<8x256xf32>
    %c0_1 = arith.constant 0 : index
    %c0_2 = arith.constant 0 : index
    %1 = vector.load %arg1[%c0_1, %c0_2] : memref<4x256xf32, #tpu.memory_space<vmem>>, vector<1x256xf32>
    %c1 = arith.constant 1 : index
    %c0_3 = arith.constant 0 : index
    %2 = vector.load %arg1[%c1, %c0_3] : memref<4x256xf32, #tpu.memory_space<vmem>>, vector<1x256xf32>
    %c2 = arith.constant 2 : index
    %c0_4 = arith.constant 0 : index
    %3 = vector.load %arg1[%c2, %c0_4] : memref<4x256xf32, #tpu.memory_space<vmem>>, vector<1x256xf32>
    %c3 = arith.constant 3 : index
    %c0_5 = arith.constant 0 : index
    %4 = vector.load %arg1[%c3, %c0_5] : memref<4x256xf32, #tpu.memory_space<vmem>>, vector<1x256xf32>
    %c16_i32 = arith.constant 16 : i32
    %5 = tpu.dynamic_rotate %0 by %c16_i32 dim 1 : vector<8x256xf32>, i32 -> vector<8x256xf32>
    %6 = vector.broadcast %1 : vector<1x256xf32> to vector<8x256xf32>
    %7 = arith.mulf %5, %6 : vector<8x256xf32>
    %c240_i32 = arith.constant 240 : i32
    %8 = tpu.dynamic_rotate %0 by %c240_i32 dim 1 : vector<8x256xf32>, i32 -> vector<8x256xf32>
    %9 = vector.broadcast %2 : vector<1x256xf32> to vector<8x256xf32>
    %10 = arith.mulf %8, %9 : vector<8x256xf32>
    %cst = arith.constant 2.000000e+00 : f32
    %11 = vector.broadcast %cst : f32 to vector<8x256xf32>
    %12 = arith.mulf %11, %0 : vector<8x256xf32>
    %13 = arith.addf %7, %12 : vector<8x256xf32>
    %14 = arith.addf %13, %10 : vector<8x256xf32>
    %15 = arith.subf %7, %10 : vector<8x256xf32>
    %c1_i32 = arith.constant 1 : i32
    %16 = tpu.dynamic_rotate %14 by %c1_i32 dim 1 : vector<8x256xf32>, i32 -> vector<8x256xf32>
    %17 = vector.broadcast %3 : vector<1x256xf32> to vector<8x256xf32>
    %18 = arith.mulf %16, %17 : vector<8x256xf32>
    %c255_i32 = arith.constant 255 : i32
    %19 = tpu.dynamic_rotate %14 by %c255_i32 dim 1 : vector<8x256xf32>, i32 -> vector<8x256xf32>
    %20 = vector.broadcast %4 : vector<1x256xf32> to vector<8x256xf32>
    %21 = arith.mulf %19, %20 : vector<8x256xf32>
    %22 = arith.subf %18, %21 : vector<8x256xf32>
    %c1_i32_6 = arith.constant 1 : i32
    %23 = tpu.dynamic_rotate %15 by %c1_i32_6 dim 1 : vector<8x256xf32>, i32 -> vector<8x256xf32>
    %24 = vector.broadcast %3 : vector<1x256xf32> to vector<8x256xf32>
    %25 = arith.mulf %23, %24 : vector<8x256xf32>
    %cst_7 = arith.constant 2.000000e+00 : f32
    %26 = vector.broadcast %cst_7 : f32 to vector<8x256xf32>
    %27 = arith.mulf %26, %15 : vector<8x256xf32>
    %28 = arith.addf %25, %27 : vector<8x256xf32>
    %c255_i32_8 = arith.constant 255 : i32
    %29 = tpu.dynamic_rotate %15 by %c255_i32_8 dim 1 : vector<8x256xf32>, i32 -> vector<8x256xf32>
    %30 = vector.broadcast %4 : vector<1x256xf32> to vector<8x256xf32>
    %31 = arith.mulf %29, %30 : vector<8x256xf32>
    %32 = arith.addf %28, %31 : vector<8x256xf32>
    %33 = math.absf %22 : vector<8x256xf32>
    %34 = math.absf %32 : vector<8x256xf32>
    %35 = arith.addf %33, %34 : vector<8x256xf32>
    %c0_9 = arith.constant 0 : index
    %c0_10 = arith.constant 0 : index
    %36 = vector.load %arg3[%c0_9, %c0_10] : memref<8x256xf32, #tpu.memory_space<vmem>>, vector<8x256xf32>
    tpu.vector_store %arg3[%c0_9, %c0_10], %35 {strides = array<i32>} : memref<8x256xf32, #tpu.memory_space<vmem>>, vector<8x256xf32>,
    return
  }
  func.func @transform_0(%arg0: i32) -> (i32, i32) {
    %c0_i32 = arith.constant 0 : i32
    %c0_i32_0 = arith.constant 0 : i32
    %c0_i32_1 = arith.constant 0 : i32
    return %c0_i32, %c0_i32_0 : i32, i32
  }
  func.func @transform_1(%arg0: i32) -> (i32, i32) {
    %c0_i32 = arith.constant 0 : i32
    %c0_i32_0 = arith.constant 0 : i32
    return %arg0, %c0_i32 : i32, i32
  }
  func.func @transform_2(%arg0: i32) -> (i32, i32) {
    %c0_i32 = arith.constant 0 : i32
    %c0_i32_0 = arith.constant 0 : i32
    return %arg0, %c0_i32 : i32, i32
  }
}

</mosaic_0001>

<bundles_post_ra>
// kernel: tpu_custom_call.1
= control target key start
LH: loop header
LB: loop body
LE: loop exit
PB: predicated region body
PF: predicated region fallthrough
CT: control target
= control target key end

     0   :  { %7 = vsyncpa [#allocation3], 0  ;;  %s301_s0 = inlined_call_operand.hbm [shape: f32[4,256], index: 0, kind: input, shape index: {}]   ;;  %s302_s1 = inlined_call_operand.hbm [shape: f32[8,256], index: 1, kind: input, shape index: {}]   ;;  %s303_s2 = inlined_call_operand.hbm [shape: f32[8,256], index: 2, kind: output, shape index: {}]  }
   0x1   :  { %8 = vsyncpa [#allocation6], 0 }
   0x2   :  { %9 = vsyncpa [#allocation4], 0  ;;  %s256_s9 = smov [#allocation2]   ;;  %s257_s11 = smov [#allocation5]  }
   0x3   :  { %s16_s10 = sshll.u32 %s256_s9, 4  ;;  %s26_s12 = sshll.u32 %s257_s11, 4  ;;  %s17_s10 = int_to_ptr.vmem [resolvable:$true] %s16_s10  ;;  %s27_s12 = int_to_ptr.vmem [resolvable:$true] %s26_s12 }
   0x4   :  { %s198_s13 = scalar_lea.vmem %s17_s10, 128  ;;  %p203_p1 = scmp.lt.s32.totalorder %s17_s10, %s17_s10 }
   0x5   :  { %p199_p0 = scmp.ne.s32.totalorder %s17_s10, %s198_s13  ;;  %p204_p2 = scmp.lt.s32.totalorder %s198_s13, %s198_s13 }
   0x7   :  { %p205_p3 = por %p204_p2, %p203_p1 }
   0x9   :  { %p206_p4 = pnand %p205_p3, %p199_p0 }
   0xb   :  { %209 = shalt.err (!%p206_p4)
}
   0xc   :  { %19 = dma.hbm_to_vmem [thread:$0]  %s301_s0, 128, %s17_s10, [#allocation3]  }
   0xd   :  { %s218_s16 = scalar_lea.vmem %s27_s12, 256  ;;  %p223_p6 = scmp.lt.s32.totalorder %s27_s12, %s27_s12 }
   0xe   :  { %p219_p5 = scmp.ne.s32.totalorder %s27_s12, %s218_s16  ;;  %p224_p7 = scmp.lt.s32.totalorder %s218_s16, %s218_s16 }
  0x10   :  { %p225_p8 = por %p224_p7, %p223_p6 }
  0x12   :  { %p226_p9 = pnand %p225_p8, %p219_p5 }
  0x14   :  { %229 = shalt.err (!%p226_p9)
}
  0x15   :  { %29 = dma.hbm_to_vmem [thread:$0]  %s302_s1, 256, %s27_s12, [#allocation6]  }
  0x16   :  { %250 = dma.done.wait [#allocation3], 128  }
  0x17   :  { %251 = vsyncadd [#allocation3], 4294967168 }
  0x18   :  { %252 = dma.done.wait [#allocation6], 256  }
  0x19   :  { %253 = vsyncadd [#allocation6], 4294967040  ;;  %v36_v0 = vld [vmem:[#allocation5] sm:$0xff]  ;;  %s258_s19 = smov 112   ;;  %s259_s20 = smov 16   ;;  %v37_v1 = vld [vmem:[#allocation5 + $0x8] sm:$0xff]  ;;  %v49_v2 = vlaneseq }
  0x1a   :  { %67 = vrot.lane.b32.xlu1 %v36_v0, %s258_s19  ;;  %45 = vrot.lane.b32.xlu0 %v36_v0, %s259_s20  ;;  %v40_v7 = vld [vmem:[#allocation2 + $0x1] ss:$4 sm:$0x3]  ;;  %v38_v8 = vld [vmem:[#allocation2] ss:$4 sm:$0x3] }
  0x1b   :  { %v56_v3 = vshrl.u32 %v49_v2, 7  ;;  %v284_v4 = vand.u32 127, %v49_v2  ;;  %v87_v15 = vmul.f32 2.0, %v36_v0  ;;  %v88_v16 = vmul.f32 2.0, %v37_v1  ;;  %s260_s0 = smov 1   ;;  %s261_s1 = smov 127  }
  0x1c   :  { %v42_v35 = vld [vmem:[#allocation2 + $0x2] ss:$4 sm:$0x3]  ;;  %v44_v36 = vld [vmem:[#allocation2 + $0x3] ss:$4 sm:$0x3] }
  0x1d   :  { %v57_v5 = vsub.s32 0, %v56_v3  ;;  %v61_v6 = vsub.s32 1, %v56_v3  ;;  %vm71_vm0 = vcmp.lt.s32.totalorder %v284_v4, 112  ;;  %vm51_vm1 = vcmp.lt.s32.totalorder %v284_v4, 16  ;;  %s262_s21 = smov [#allocation7]  }
  0x1e   :  { %69 = vrot.lane.b32.xlu1 %v37_v1, %s258_s19  ;;  %47 = vrot.lane.b32.xlu0 %v37_v1, %s259_s20  ;;  %vm99_vm2 = vcmp.lt.s32.totalorder %v284_v4, 1  ;;  %vm119_vm3 = vcmp.lt.s32.totalorder %v284_v4, 127  ;;  %s173_s22 = sshll.u32 %s262_s21, 4  ;;  %s174_s22 = int_to_ptr.vmem [resolvable:$true] %s173_s22 }
  0x1f   :  { %v78_v11 = vrot.slane %v40_v7, %v57_v5  ;;  %v82_v12 = vrot.slane %v40_v7, %v61_v6  ;;  %v58_v13 = vrot.slane %v38_v8, %v57_v5  ;;  %v62_v14 = vrot.slane %v38_v8, %v61_v6  ;;  %s230_s23 = scalar_lea.vmem %s174_s22, 256  ;;  %p235_p11 = scmp.lt.s32.totalorder %s174_s22, %s174_s22 }
  0x20   :  { %v106_v39 = vrot.slane %v42_v35, %v57_v5  ;;  %v110_v40 = vrot.slane %v42_v35, %v61_v6  ;;  %v126_v42 = vrot.slane %v44_v36, %v57_v5  ;;  %v130_v43 = vrot.slane %v44_v36, %v61_v6  ;;  %p231_p10 = scmp.ne.s32.totalorder %s174_s22, %s230_s23  ;;  %p236_p12 = scmp.lt.s32.totalorder %s230_s23, %s230_s23 }
  0x22   :  { %p237_p13 = por %p236_p12, %p235_p11 }
  0x24   :  { %p238_p0 = pnand %p237_p13, %p231_p10 }
  0x8c   :  { %v68_v9 = vpop.permute.xlu1 %67  ;;  %v46_v10 = vpop.permute.xlu0 %45 }
  0x90   :  { %v70_v17 = vpop.permute.xlu1 %69  ;;  %v48_v18 = vpop.permute.xlu0 %47 }
  0x91   :  { %v72_v19 = vsel %vm71_vm0, %v68_v9, %v70_v17  ;;  %v73_v20 = vsel %vm71_vm0, %v70_v17, %v68_v9  ;;  %v52_v21 = vsel %vm51_vm1, %v46_v10, %v48_v18  ;;  %v53_v22 = vsel %vm51_vm1, %v48_v18, %v46_v10 }
  0x92   :  { %v85_v23 = vmul.f32 %v78_v11, %v72_v19  ;;  %v86_v24 = vmul.f32 %v82_v12, %v73_v20  ;;  %v65_v25 = vmul.f32 %v58_v13, %v53_v22  ;;  %v66_v26 = vmul.f32 %v62_v14, %v52_v21 }
  0x94   :  { %v89_v27 = vadd.f32 %v87_v15, %v65_v25  ;;  %v90_v28 = vadd.f32 %v88_v16, %v66_v26  ;;  %v93_v29 = vsub.f32 %v65_v25, %v85_v23  ;;  %v94_v30 = vsub.f32 %v66_v26, %v86_v24 }
  0x96   :  { %137 = vrot.lane.b32.xlu0 %v93_v29, %s260_s0  ;;  %139 = vrot.lane.b32.xlu1 %v94_v30, %s260_s0  ;;  %v92_v31 = vadd.f32 %v90_v28, %v86_v24  ;;  %v91_v32 = vadd.f32 %v89_v27, %v85_v23  ;;  %v145_v55 = vmul.f32 2.0, %v93_v29  ;;  %v146_v57 = vmul.f32 2.0, %v94_v30 }
  0x9a   :  { %97 = vrot.lane.b32.xlu1 %v92_v31, %s260_s0  ;;  %95 = vrot.lane.b32.xlu0 %v91_v32, %s260_s0 }
  0x9e   :  { %117 = vrot.lane.b32.xlu1 %v92_v31, %s261_s1  ;;  %115 = vrot.lane.b32.xlu0 %v91_v32, %s261_s1 }
  0xa2   :  { %151 = vrot.lane.b32.xlu1 %v94_v30, %s261_s1  ;;  %149 = vrot.lane.b32.xlu0 %v93_v29, %s261_s1 }
 0x108   :  { %v138_v33 = vpop.permute.xlu0 %137  ;;  %v140_v34 = vpop.permute.xlu1 %139 }
 0x109   :  { %v142_v41 = vsel %vm99_vm2, %v140_v34, %v138_v33  ;;  %v141_v44 = vsel %vm99_vm2, %v138_v33, %v140_v34 }
 0x10a   :  { %v143_v48 = vmul.f32 %v142_v41, %v106_v39  ;;  %v144_v52 = vmul.f32 %v141_v44, %v110_v40 }
 0x10c   :  { %v98_v37 = vpop.permute.xlu1 %97  ;;  %v96_v38 = vpop.permute.xlu0 %95  ;;  %v147_v61 = vadd.f32 %v145_v55, %v143_v48  ;;  %v148_v1 = vadd.f32 %v146_v57, %v144_v52 }
 0x10d   :  { %v101_v45 = vsel %vm99_vm2, %v98_v37, %v96_v38  ;;  %v100_v49 = vsel %vm99_vm2, %v96_v38, %v98_v37 }
 0x10e   :  { %v113_v56 = vmul.f32 %v106_v39, %v101_v45  ;;  %v114_v58 = vmul.f32 %v110_v40, %v100_v49 }
 0x110   :  { %v118_v46 = vpop.permute.xlu1 %117  ;;  %v116_v47 = vpop.permute.xlu0 %115 }
 0x111   :  { %v120_v50 = vsel %vm119_vm3, %v116_v47, %v118_v46  ;;  %v121_v51 = vsel %vm119_vm3, %v118_v46, %v116_v47 }
 0x112   :  { %v133_v53 = vmul.f32 %v126_v42, %v120_v50  ;;  %v134_v54 = vmul.f32 %v130_v43, %v121_v51 }
 0x114   :  { %v152_v59 = vpop.permute.xlu1 %151  ;;  %v150_v60 = vpop.permute.xlu0 %149  ;;  %v135_v62 = vsub.f32 %v113_v56, %v133_v53  ;;  %v136_v2 = vsub.f32 %v114_v58, %v134_v54 }
 0x115   :  { %v153_v63 = vsel %vm119_vm3, %v150_v60, %v152_v59  ;;  %v154_v0 = vsel %vm119_vm3, %v152_v59, %v150_v60 }
 0x116   :  { %v155_v3 = vmul.f32 %v153_v63, %v126_v42  ;;  %v156_v5 = vmul.f32 %v154_v0, %v130_v43  ;;  %v159_v8 = vand.u32 2147483647, %v135_v62  ;;  %v160_v9 = vand.u32 2147483647, %v136_v2 }
 0x118   :  { %v157_v6 = vadd.f32 %v155_v3, %v147_v61  ;;  %v158_v7 = vadd.f32 %v156_v5, %v148_v1 }
 0x11a   :  { %v161_v10 = vand.u32 2147483647, %v157_v6  ;;  %v162_v11 = vand.u32 2147483647, %v158_v7 }
 0x11c   :  { %v163_v12 = vadd.f32 %v161_v10, %v159_v8  ;;  %v164_v13 = vadd.f32 %v162_v11, %v160_v9 }
 0x11e   :  { %165 = vst [vmem:[#allocation7] sm:$0xff] %v163_v12  ;;  %166 = vst [vmem:[#allocation7 + $0x8] sm:$0xff] %v164_v13 }
 0x11f   :  { %241 = shalt.err (!%p238_p0)
}
 0x120   :  { %176 = dma.vmem_to_hbm [thread:$0]  %s174_s22, 256, %s303_s2, [#allocation4]  }
 0x121   :  { %254 = dma.done.wait [#allocation4], 256  }
 0x122   :  { %255 = vsyncadd [#allocation4], 4294967040 }
 0x123   :  { %180 = vsyncpa [#allocation3], 1 }
 0x124   :  { %181 = vsyncpa [#allocation6], 1 }
 0x125   :  { %182 = vsyncpa [#allocation4], 1 }

</bundles_post_ra>
